<compile_context>
chip_gen: v7x
topology: tpu7x:2x2x1
jax: 0.10.0
libtpu: 0.0.40
codegen_flags: <defaults>
</compile_context>

<pallas_src>
import math
import functools

import jax
import jax.numpy as jnp
from jax.experimental import pallas as pl
from jax.experimental.pallas import tpu as pltpu


# MXU operands are bf16 on all generations (the v5e/v6e/v7x MXUs are natively
# bf16); accumulation and all element-wise / statistics math stay in f32.
MATMUL_DTYPE = jnp.bfloat16


# ---------------------------------------------------------------------------
# Small helpers
# ---------------------------------------------------------------------------
def _scoped_vmem_limit():
    """Half of physical VMEM (64 MiB on v5e/v6e, 32 MiB on v7x); None if unknown."""
    try:
        cap = getattr(pltpu.get_tpu_info(), "vmem_capacity_bytes", None)
        if cap:
            return int(cap) // 2
    except Exception:
        pass
    return None


def _mosaic_params(dimension_semantics):
    kw = dict(dimension_semantics=dimension_semantics)
    lim = _scoped_vmem_limit()
    if lim is not None:
        kw["vmem_limit_bytes"] = lim
    return pltpu.CompilerParams(**kw)


def _pick_row_tile(total, max_rows):
    """Largest multiple-of-8 divisor of `total` that is <= max_rows (None if none)."""
    max_rows = min(int(max_rows), int(total))
    best = None
    t = 8
    while t <= max_rows:
        if total % t == 0:
            best = t
        t += 8
    return best


# ---------------------------------------------------------------------------
# Pallas kernels 1a/1b/1c: 1x1 conv + GroupNorm  (the `input_proj` branch)
# ---------------------------------------------------------------------------
def _proj_gn_fused_kernel(x_ref, w_ref, b_ref, gamma_ref, beta_ref, *rest,
                          hw, group_size, eps, compute_dtype):
    """One grid step == one image; conv + two-pass GroupNorm fully fused."""
    if group_size == 1:
        (o_ref,) = rest
        gmat_ref = gmat_t_ref = None
    else:
        gmat_ref, gmat_t_ref, o_ref = rest

    # In-kernel bf16 cast of the activations (VPU, hidden under the MXU); the
    # wrapper never makes a separate HBM cast pass.
    x = x_ref[0].astype(compute_dtype)                      # (HW, Cin)
    y = jnp.dot(x, w_ref[...], preferred_element_type=jnp.float32) + b_ref[...]

    # Two-pass GroupNorm: mean first, then centered sum of squares.
    # Row reductions -> XLU; (1, hidden) broadcasts -> VPU.  No membership
    # matmuls; the tiny group-fold matmuls only exist when group_size > 1.
    s1 = jnp.sum(y, axis=0, keepdims=True)                  # (1, hidden)
    if group_size == 1:
        mean_c = s1 * (1.0 / hw)
    else:
        n_per_group = hw * group_size
        mean_g = jnp.dot(s1, gmat_ref[...],
                         preferred_element_type=jnp.float32) / n_per_group
        mean_c = jnp.dot(mean_g, gmat_t_ref[...],
                         preferred_element_type=jnp.float32)

    d = y - mean_c
    ss = jnp.sum(d * d, axis=0, keepdims=True)              # (1, hidden)
    if group_size == 1:
        var_c = ss * (1.0 / hw)
    else:
        var_g = jnp.dot(ss, gmat_ref[...],
                        preferred_element_type=jnp.float32) / n_per_group
        var_c = jnp.dot(var_g, gmat_t_ref[...],
                        preferred_element_type=jnp.float32)

    inv_std = jax.lax.rsqrt(jnp.maximum(var_c, 0.0) + eps)
    o_ref[0] = d * inv_std * gamma_ref[...] + beta_ref[...]


def _proj_conv_stats_kernel(x_ref, w_ref, b_ref, *rest,
                            hw, group_size, eps, n_tiles, compute_dtype):
    """Row-tiled pass 1: conv, write un-normalized y, accumulate per-image stats."""
    if group_size == 1:
        y_ref, stats_ref, s1_ref, s2_ref = rest
        gmat_ref = gmat_t_ref = None
    else:
        gmat_ref, gmat_t_ref, y_ref, stats_ref, s1_ref, s2_ref = rest

    t = pl.program_id(1)

    @pl.when(t == 0)
    def _():
        s1_ref[...] = jnp.zeros_like(s1_ref)
        s2_ref[...] = jnp.zeros_like(s2_ref)

    x = x_ref[0].astype(compute_dtype)                      # in-kernel bf16 cast
    y = jnp.dot(x, w_ref[...], preferred_element_type=jnp.float32) + b_ref[...]
    y_ref[0] = y
    s1_ref[...] += jnp.sum(y, axis=0, keepdims=True)
    s2_ref[...] += jnp.sum(y * y, axis=0, keepdims=True)

    @pl.when(t == n_tiles - 1)
    def _():
        s1 = s1_ref[...]
        s2 = s2_ref[...]
        if group_size == 1:
            mean_c = s1 * (1.0 / hw)
            var_c = s2 * (1.0 / hw) - mean_c * mean_c
        else:
            n_per_group = hw * group_size
            mean_g = jnp.dot(s1, gmat_ref[...],
                             preferred_element_type=jnp.float32) / n_per_group
            ex2_g = jnp.dot(s2, gmat_ref[...],
                            preferred_element_type=jnp.float32) / n_per_group
            var_g = ex2_g - mean_g * mean_g
            mean_c = jnp.dot(mean_g, gmat_t_ref[...],
                             preferred_element_type=jnp.float32)
            var_c = jnp.dot(var_g, gmat_t_ref[...],
                            preferred_element_type=jnp.float32)
        inv_std = jax.lax.rsqrt(jnp.maximum(var_c, 0.0) + eps)
        stats_ref[0] = jnp.concatenate([mean_c, inv_std], axis=0)   # (2, hidden)


def _gn_apply_kernel(y_ref, stats_ref, gamma_ref, beta_ref, o_ref):
    """Row-tiled pass 2: normalize each row tile with its image's stats."""
    y = y_ref[0]
    st = stats_ref[0]                                        # (2, hidden)
    mean_c = st[0:1, :]
    inv_std = st[1:2, :]
    o_ref[0] = (y - mean_c) * inv_std * gamma_ref[...] + beta_ref[...]


def input_proj_groupnorm(x_flat, w_mat, bias, gamma, beta, groups,
                         *, max_rows_per_tile=None, compute_dtype=MATMUL_DTYPE):
    """x_flat: (N, HW, Cin) float32.  Returns (N, HW, hidden) float32."""
    n, hw, cin = x_flat.shape
    hidden = w_mat.shape[1]
    gs = hidden // groups
    eps = 1e-5

    w2 = w_mat.astype(compute_dtype)                         # tiny, one-time cast
    bias2 = bias.reshape(1, hidden).astype(jnp.float32)
    gamma2 = gamma.reshape(1, hidden).astype(jnp.float32)
    beta2 = beta.reshape(1, hidden).astype(jnp.float32)

    gmat = gmat_t = None
    if gs > 1:
        ch = jnp.arange(hidden)
        gmat = (ch[:, None] // gs == jnp.arange(groups)[None, :]).astype(jnp.float32)
        gmat_t = gmat.T

    # Row-tile sizing from the per-generation VMEM budget (64 MiB v7x physical,
    # 128 MiB v5e/v6e).  If a whole image fits, use the fully fused kernel.
    if max_rows_per_tile is None:
        budget = (_scoped_vmem_limit() or (32 << 20)) // 4
        bytes_per_row = 4 * (2 * cin + 6 * hidden)           # dbuf'd x + y/d/out temps
        max_rows_per_tile = max(8, budget // max(bytes_per_row, 1))
    row_tile = _pick_row_tile(hw, max_rows_per_tile)

    if row_tile is None or row_tile >= hw:
        # ---- fused path: grid over images ("parallel" -> both v7x TCs) -----
        in_specs = [
            pl.BlockSpec((1, hw, cin), lambda i: (i, 0, 0)),
            pl.BlockSpec((cin, hidden), lambda i: (0, 0)),
            pl.BlockSpec((1, hidden), lambda i: (0, 0)),
            pl.BlockSpec((1, hidden), lambda i: (0, 0)),
            pl.BlockSpec((1, hidden), lambda i: (0, 0)),
        ]
        operands = [x_flat, w2, bias2, gamma2, beta2]
        if gs > 1:
            in_specs += [pl.BlockSpec((hidden, groups), lambda i: (0, 0)),
                         pl.BlockSpec((groups, hidden), lambda i: (0, 0))]
            operands += [gmat, gmat_t]
        kernel = functools.partial(_proj_gn_fused_kernel, hw=hw, group_size=gs,
                                   eps=eps, compute_dtype=compute_dtype)
        return pl.pallas_call(
            kernel,
            grid=(n,),
            out_shape=jax.ShapeDtypeStruct((n, hw, hidden), jnp.float32),
            in_specs=in_specs,
            out_specs=pl.BlockSpec((1, hw, hidden), lambda i: (i, 0, 0)),
            compiler_params=_mosaic_params(("parallel",)),
        )(*operands)

    # ---- tiled path: (image, row-tile) grid; accumulate-then-finalize -------
    n_tiles = hw // row_tile

    in_specs = [
        pl.BlockSpec((1, row_tile, cin), lambda i, t: (i, t, 0)),
        pl.BlockSpec((cin, hidden), lambda i, t: (0, 0)),
        pl.BlockSpec((1, hidden), lambda i, t: (0, 0)),
    ]
    operands = [x_flat, w2, bias2]
    if gs > 1:
        in_specs += [pl.BlockSpec((hidden, groups), lambda i, t: (0, 0)),
                     pl.BlockSpec((groups, hidden), lambda i, t: (0, 0))]
        operands += [gmat, gmat_t]
    kernel_a = functools.partial(_proj_conv_stats_kernel, hw=hw, group_size=gs,
                                 eps=eps, n_tiles=n_tiles,
                                 compute_dtype=compute_dtype)
    y_unnorm, stats = pl.pallas_call(
        kernel_a,
        grid=(n, n_tiles),
        out_shape=(jax.ShapeDtypeStruct((n, hw, hidden), jnp.float32),
                   jax.ShapeDtypeStruct((n, 2, hidden), jnp.float32)),
        in_specs=in_specs,
        out_specs=(pl.BlockSpec((1, row_tile, hidden), lambda i, t: (i, t, 0)),
                   pl.BlockSpec((1, 2, hidden), lambda i, t: (i, 0, 0))),
        scratch_shapes=[pltpu.VMEM((1, hidden), jnp.float32),
                        pltpu.VMEM((1, hidden), jnp.float32)],
        compiler_params=_mosaic_params(("parallel", "arbitrary")),
    )(*operands)

    return pl.pallas_call(
        _gn_apply_kernel,
        grid=(n, n_tiles),
        out_shape=jax.ShapeDtypeStruct((n, hw, hidden), jnp.float32),
        in_specs=[pl.BlockSpec((1, row_tile, hidden), lambda i, t: (i, t, 0)),
                  pl.BlockSpec((1, 2, hidden), lambda i, t: (i, 0, 0)),
                  pl.BlockSpec((1, hidden), lambda i, t: (0, 0)),
                  pl.BlockSpec((1, hidden), lambda i, t: (0, 0))],
        out_specs=pl.BlockSpec((1, row_tile, hidden), lambda i, t: (i, t, 0)),
        compiler_params=_mosaic_params(("parallel", "parallel")),
    )(y_unnorm, stats, gamma2, beta2)


# ---------------------------------------------------------------------------
# Pallas kernel 2: detection head (class_embed + bbox_embed MLP + sigmoid box)
# ---------------------------------------------------------------------------
def _head_kernel(hs_ref, ref_ref, wf_ref, bf_ref, w2_ref, b2_ref, w3_ref, b3_ref,
                 logits_ref, boxes_ref, *, c_pad, compute_dtype):
    x = hs_ref[...].astype(compute_dtype)          # in-kernel bf16 cast (VPU)

    # Fused class_embed + bbox layer 1: one MXU call, 128-aligned split.
    z = jnp.dot(x, wf_ref[...], preferred_element_type=jnp.float32) + bf_ref[...]
    logits_ref[...] = z[:, :c_pad]
    h = jnp.maximum(z[:, c_pad:], 0.0)

    h = jnp.maximum(jnp.dot(h.astype(compute_dtype), w2_ref[...],
                            preferred_element_type=jnp.float32) + b2_ref[...], 0.0)
    box = jnp.dot(h.astype(compute_dtype), w3_ref[...],
                  preferred_element_type=jnp.float32) + b3_ref[...]   # (rows, 128)

    # tmp[..., :2] += inverse_sigmoid(reference)   (reference last dim == 2)
    r = jnp.clip(ref_ref[...], 0.0, 1.0)
    inv = jnp.log(jnp.maximum(r, 1e-5) / jnp.maximum(1.0 - r, 1e-5))  # (rows, 2)
    lane = jax.lax.broadcasted_iota(jnp.int32, box.shape, 1)
    add = (jnp.where(lane == 0, inv[:, 0:1], 0.0)
           + jnp.where(lane == 1, inv[:, 1:2], 0.0))
    # Dead lanes (>= 4) are sliced off in the wrapper.
    boxes_ref[...] = jax.nn.sigmoid(box + add)


def detection_head(hs, refs, wc, bc, w1, b1, w2, b2, w3, b3,
                   *, max_rows_per_tile=1024, compute_dtype=MATMUL_DTYPE):
    """hs: (L, B, Q, D), refs: (L, B, Q, 2) -> logits (L,B,Q,C), boxes (L,B,Q,4)."""
    L, B, Q, D = hs.shape
    C = wc.shape[1]                       # wc stored as (D, C) = torch Linear weight^T
    DH = w1.shape[1]
    rows = L * B * Q
    rows_p = 8 * pl.cdiv(rows, 8)
    Cp = 128 * pl.cdiv(C, 128)            # lane-dense logits width
    DHp = 128 * pl.cdiv(DH, 128)          # lane-dense MLP hidden width
    BOXW = 128                            # lane-dense box slab width

    hs2 = hs.reshape(rows, D)             # stays f32: the bf16 cast is in-kernel
    refs2 = refs.reshape(rows, 2)
    if rows_p != rows:
        hs2 = jnp.pad(hs2, ((0, rows_p - rows), (0, 0)))
        refs2 = jnp.pad(refs2, ((0, rows_p - rows), (0, 0)))

    f32 = jnp.float32
    # class_embed and bbox layer-1 fused into one 128-aligned weight slab.
    wc_p = jnp.zeros((D, Cp), f32).at[:, :C].set(wc)
    w1_p = jnp.zeros((D, DHp), f32).at[:, :DH].set(w1)
    wf = jnp.concatenate([wc_p, w1_p], axis=1).astype(compute_dtype)
    bf = jnp.concatenate([jnp.zeros((Cp,), f32).at[:C].set(bc),
                          jnp.zeros((DHp,), f32).at[:DH].set(b1)]).reshape(1, Cp + DHp)
    w2_p = jnp.zeros((DHp, DHp), f32).at[:DH, :DH].set(w2).astype(compute_dtype)
    b2_p = jnp.zeros((1, DHp), f32).at[0, :DH].set(b2)
    w3_p = jnp.zeros((DHp, BOXW), f32).at[:DH, :4].set(w3).astype(compute_dtype)
    b3_p = jnp.zeros((1, BOXW), f32).at[0, :4].set(b3)

    row_tile = _pick_row_tile(rows_p, max_rows_per_tile) or rows_p
    n_tiles = rows_p // row_tile

    mm = D * (Cp + DHp) + DHp * DHp + DHp * BOXW
    cost = pl.CostEstimate(
        flops=2 * rows_p * mm,
        transcendentals=rows_p * (BOXW + 4),
        bytes_accessed=4 * rows_p * (D + 2 + Cp + BOXW) + 2 * mm)

    kernel = functools.partial(_head_kernel, c_pad=Cp, compute_dtype=compute_dtype)
    logits_p, boxes_p = pl.pallas_call(
        kernel,
        grid=(n_tiles,),
        out_shape=(jax.ShapeDtypeStruct((rows_p, Cp), jnp.float32),
                   jax.ShapeDtypeStruct((rows_p, BOXW), jnp.float32)),
        in_specs=[
            pl.BlockSpec((row_tile, D), lambda i: (i, 0)),
            pl.BlockSpec((row_tile, 2), lambda i: (i, 0)),
            pl.BlockSpec((D, Cp + DHp), lambda i: (0, 0)),   # resident weights
            pl.BlockSpec((1, Cp + DHp), lambda i: (0, 0)),
            pl.BlockSpec((DHp, DHp), lambda i: (0, 0)),
            pl.BlockSpec((1, DHp), lambda i: (0, 0)),
            pl.BlockSpec((DHp, BOXW), lambda i: (0, 0)),
            pl.BlockSpec((1, BOXW), lambda i: (0, 0)),
        ],
        out_specs=(pl.BlockSpec((row_tile, Cp), lambda i: (i, 0)),
                   pl.BlockSpec((row_tile, BOXW), lambda i: (i, 0))),
        compiler_params=_mosaic_params(("parallel",)),
        cost_estimate=cost,
    )(hs2, refs2, wf, bf, w2_p, b2_p, w3_p, b3_p)

    logits = logits_p[:rows, :C].reshape(L, B, Q, C)
    boxes = boxes_p[:rows, :4].reshape(L, B, Q, 4)
    return logits, boxes


# ---------------------------------------------------------------------------
# Pure-JAX references (sanity check only)
# ---------------------------------------------------------------------------
def ref_input_proj(x_nchw, wconv, bconv, gamma, beta, groups):
    n, cin, h, w = x_nchw.shape
    hidden = wconv.shape[0]
    y = jnp.einsum('nchw,oc->nohw', x_nchw, wconv, precision='highest') \
        + bconv[None, :, None, None]
    gs = hidden // groups
    yg = y.reshape(n, groups, gs, h, w)
    mean = yg.mean(axis=(2, 3, 4), keepdims=True)
    var = ((yg - mean) ** 2).mean(axis=(2, 3, 4), keepdims=True)
    yn = ((yg - mean) / jnp.sqrt(var + 1e-5)).reshape(n, hidden, h, w)
    return yn * gamma[None, :, None, None] + beta[None, :, None, None]


def ref_head(hs, refs, wc, bc, w1, b1, w2, b2, w3, b3):
    logits = jnp.einsum('lbqd,dc->lbqc', hs, wc, precision='highest') + bc
    h = jax.nn.relu(jnp.einsum('lbqd,de->lbqe', hs, w1, precision='highest') + b1)
    h = jax.nn.relu(jnp.einsum('lbqd,de->lbqe', h, w2, precision='highest') + b2)
    tmp = jnp.einsum('lbqd,df->lbqf', h, w3, precision='highest') + b3
    r = jnp.clip(refs, 0.0, 1.0)
    inv = jnp.log(jnp.maximum(r, 1e-5) / jnp.maximum(1.0 - r, 1e-5))
    tmp = tmp.at[..., :2].add(inv)
    return logits, jax.nn.sigmoid(tmp)


# ---------------------------------------------------------------------------
# Main: deterministic params + synthetic inputs + forward
# ---------------------------------------------------------------------------
if __name__ == "__main__":
    NUM_FRAMES = 2          # samples: [num_frames x 3 x H x W] -> one video
    BATCH = 1               # n // num_frames
    CIN = 8                 # backbone.num_channels[0]
    H = W = 8
    HIDDEN = 32             # transformer.d_model (divisible by 32 for GroupNorm)
    GROUPS = 32
    NUM_CLASSES = 16
    NUM_QUERIES = 8
    NUM_DEC_LAYERS = 3      # transformer.decoder.num_layers
    NUM_FEATURE_LEVELS = 1

    key = jax.random.PRNGKey(0)
    ks = jax.random.split(key, 12)

    # --- parameters (deterministic, mirroring the PyTorch inits) -----------
    bound = math.sqrt(6.0 / (CIN + HIDDEN))
    conv_w = jax.random.uniform(ks[0], (HIDDEN, CIN), jnp.float32, -bound, bound)
    conv_b = jnp.zeros((HIDDEN,), jnp.float32)
    gn_gamma = jnp.ones((HIDDEN,), jnp.float32)
    gn_beta = jnp.zeros((HIDDEN,), jnp.float32)

    lin_bound = 1.0 / math.sqrt(HIDDEN)
    wc = jax.random.uniform(ks[1], (HIDDEN, NUM_CLASSES), jnp.float32,
                            -lin_bound, lin_bound)   # stored (D, C) == torch weight^T
    bias_value = -math.log((1 - 0.01) / 0.01)
    bc = jnp.full((NUM_CLASSES,), bias_value, jnp.float32)

    w1 = jax.random.uniform(ks[2], (HIDDEN, HIDDEN), jnp.float32, -lin_bound, lin_bound)
    b1 = jax.random.uniform(ks[3], (HIDDEN,), jnp.float32, -lin_bound, lin_bound)
    w2 = jax.random.uniform(ks[4], (HIDDEN, HIDDEN), jnp.float32, -lin_bound, lin_bound)
    b2 = jax.random.uniform(ks[5], (HIDDEN,), jnp.float32, -lin_bound, lin_bound)
    w3 = jnp.zeros((HIDDEN, 4), jnp.float32)
    b3 = jnp.zeros((4,), jnp.float32).at[2:].set(-2.0)

    # query_embed exists in the module but is consumed by the (stubbed) transformer.
    query_embed = jax.random.normal(ks[6], (NUM_QUERIES, HIDDEN * 2), jnp.float32)

    # --- synthetic module inputs -------------------------------------------
    feat = jax.random.normal(ks[7], (NUM_FRAMES, CIN, H, W), jnp.float32)
    hs = jax.random.normal(ks[8], (NUM_DEC_LAYERS, BATCH, NUM_QUERIES, HIDDEN),
                           jnp.float32)
    init_reference = jax.nn.sigmoid(
        jax.random.normal(ks[9], (BATCH, NUM_QUERIES, 2), jnp.float32))
    inter_references = jax.nn.sigmoid(
        jax.random.normal(ks[10], (NUM_DEC_LAYERS - 1, BATCH, NUM_QUERIES, 2),
                          jnp.float32))

    # --- forward: input projection (Pallas, per-image fused conv + GroupNorm) ---
    feat_flat = feat.transpose(0, 2, 3, 1).reshape(NUM_FRAMES, H * W, CIN)
    src_proj_flat = input_proj_groupnorm(feat_flat, conv_w.T, conv_b,
                                         gn_gamma, gn_beta, GROUPS)
    src_proj = src_proj_flat.reshape(NUM_FRAMES, H, W, HIDDEN).transpose(0, 3, 1, 2)

    # glue: reshape/permute as in forward() and collect per-frame srcs
    src_r = src_proj.reshape(NUM_FRAMES // NUM_FRAMES, NUM_FRAMES, HIDDEN, H, W)
    src_r = src_r.transpose(1, 0, 2, 3, 4)
    srcs = [src_r[f] for f in range(NUM_FRAMES)]   # each (1, HIDDEN, H, W)

    # --- forward: detection heads (Pallas, all decoder levels row-stacked) ---
    refs_all = jnp.concatenate([init_reference[None], inter_references], axis=0)
    outputs_class, outputs_coord = detection_head(
        hs, refs_all, wc, bc, w1, b1, w2, b2, w3, b3)

    out = {
        'pred_logits': outputs_class[-1],
        'pred_boxes': outputs_coord[-1],
        'aux_outputs': [
            {'pred_logits': outputs_class[i], 'pred_boxes': outputs_coord[i]}
            for i in range(NUM_DEC_LAYERS - 1)
        ],
    }

    jax.block_until_ready(src_proj)
    jax.block_until_ready(out['pred_logits'])
    jax.block_until_ready(out['pred_boxes'])

    # --- sanity checks vs pure-JAX references --------------------------------
    TOL = 3e-2
    ref_proj = ref_input_proj(feat, conv_w, conv_b, gn_gamma, gn_beta, GROUPS)
    ref_logits, ref_boxes = ref_head(hs, refs_all, wc, bc, w1, b1, w2, b2, w3, b3)
    assert out['pred_logits'].shape == (BATCH, NUM_QUERIES, NUM_CLASSES)
    assert out['pred_boxes'].shape == (BATCH, NUM_QUERIES, 4)
    assert jnp.all(jnp.isfinite(outputs_class)) and jnp.all(jnp.isfinite(outputs_coord))
    assert jnp.allclose(src_proj, ref_proj, atol=TOL, rtol=TOL)
    assert jnp.allclose(outputs_class, ref_logits, atol=TOL, rtol=TOL)
    assert jnp.allclose(outputs_coord, ref_boxes, atol=TOL, rtol=TOL)

    # also exercise the row-tiled GroupNorm path (two pallas_calls, per-image
    # accumulate/finalize) and a multi-step detection-head grid at toy scale
    src_proj_tiled = input_proj_groupnorm(feat_flat, conv_w.T, conv_b,
                                          gn_gamma, gn_beta, GROUPS,
                                          max_rows_per_tile=16)
    src_proj_tiled_nchw = src_proj_tiled.reshape(
        NUM_FRAMES, H, W, HIDDEN).transpose(0, 3, 1, 2)
    cls_t, box_t = detection_head(hs, refs_all, wc, bc, w1, b1, w2, b2, w3, b3,
                                  max_rows_per_tile=8)
    assert jnp.allclose(src_proj_tiled_nchw, ref_proj, atol=TOL, rtol=TOL)
    assert jnp.allclose(cls_t, outputs_class, atol=1e-4, rtol=1e-4)
    assert jnp.allclose(box_t, outputs_coord, atol=1e-4, rtol=1e-4)

    print("KERNEL_OK")
</pallas_src>

<mosaic_0001>
module attributes {stable_mosaic.version = 11 : i64} {
  func.func @_proj_gn_fused_kernel(%arg0: i32, %arg1: memref<1x64x8xf32, #tpu.memory_space<vmem>>, %arg2: memref<8x32xbf16, #tpu.memory_space<vmem>>, %arg3: memref<1x32xf32, #tpu.memory_space<vmem>>, %arg4: memref<1x32xf32, #tpu.memory_space<vmem>>, %arg5: memref<1x32xf32, #tpu.memory_space<vmem>>, %arg6: memref<1x64x32xf32, #tpu.memory_space<vmem>>) attributes {dimension_semantics = [#tpu.dimension_semantics<parallel>], iteration_bounds = array<i64: 2>, scalar_prefetch = 0 : i64, scratch_operands = 0 : i64, tpu.core_type = #tpu.core_type<tc>, window_params = [{transform_indices = @transform_0, window_bounds = array<i64: 1, 64, 8>}, {pipeline_mode = #tpu.pipeline_mode<synchronous>, transform_indices = @transform_1, window_bounds = array<i64: 8, 32>}, {pipeline_mode = #tpu.pipeline_mode<synchronous>, transform_indices = @transform_2, window_bounds = array<i64: 1, 32>}, {pipeline_mode = #tpu.pipeline_mode<synchronous>, transform_indices = @transform_3, window_bounds = array<i64: 1, 32>}, {pipeline_mode = #tpu.pipeline_mode<synchronous>, transform_indices = @transform_4, window_bounds = array<i64: 1, 32>}, {transform_indices = @transform_5, window_bounds = array<i64: 1, 64, 32>}]} {
    %c0 = arith.constant 0 : index
    %c0_0 = arith.constant 0 : index
    %c0_1 = arith.constant 0 : index
    %0 = vector.load %arg1[%c0, %c0_0, %c0_1] : memref<1x64x8xf32, #tpu.memory_space<vmem>>, vector<1x64x8xf32>
    %1 = vector.shape_cast %0 : vector<1x64x8xf32> to vector<64x8xf32>
    %2 = arith.truncf %1 : vector<64x8xf32> to vector<64x8xbf16>
    %c0_2 = arith.constant 0 : index
    %c0_3 = arith.constant 0 : index
    %3 = vector.load %arg2[%c0_2, %c0_3] : memref<8x32xbf16, #tpu.memory_space<vmem>>, vector<8x32xbf16>
    %cst = arith.constant dense<0.000000e+00> : vector<64x32xf32>
    %4 = tpu.matmul %2, %3, %cst {dimension_numbers = #tpu.dot_dimension_numbers<[1], [0], [0], [1], [0, 0, 1, 1], [], []>} : vector<64x8xbf16>, vector<8x32xbf16>, vector<64x32xf32> -> vector<64x32xf32>
    %c0_4 = arith.constant 0 : index
    %c0_5 = arith.constant 0 : index
    %5 = vector.load %arg3[%c0_4, %c0_5] : memref<1x32xf32, #tpu.memory_space<vmem>>, vector<1x32xf32>
    %6 = vector.broadcast %5 : vector<1x32xf32> to vector<64x32xf32>
    %7 = arith.addf %4, %6 : vector<64x32xf32>
    %cst_6 = arith.constant dense<0.000000e+00> : vector<32xf32>
    %8 = vector.multi_reduction <add>, %7, %cst_6 [0] : vector<64x32xf32> to vector<32xf32>
    %9 = vector.shape_cast %8 : vector<32xf32> to vector<1x32xf32>
    %cst_7 = arith.constant 1.562500e-02 : f32
    %10 = vector.broadcast %cst_7 : f32 to vector<1x32xf32>
    %11 = arith.mulf %9, %10 : vector<1x32xf32>
    %12 = vector.broadcast %11 : vector<1x32xf32> to vector<64x32xf32>
    %13 = arith.subf %7, %12 : vector<64x32xf32>
    %14 = arith.mulf %13, %13 : vector<64x32xf32>
    %cst_8 = arith.constant dense<0.000000e+00> : vector<32xf32>
    %15 = vector.multi_reduction <add>, %14, %cst_8 [0] : vector<64x32xf32> to vector<32xf32>
    %16 = vector.shape_cast %15 : vector<32xf32> to vector<1x32xf32>
    %cst_9 = arith.constant 1.562500e-02 : f32
    %17 = vector.broadcast %cst_9 : f32 to vector<1x32xf32>
    %18 = arith.mulf %16, %17 : vector<1x32xf32>
    %cst_10 = arith.constant 0.000000e+00 : f32
    %19 = vector.broadcast %cst_10 : f32 to vector<1x32xf32>
    %20 = arith.maximumf %18, %19 : vector<1x32xf32>
    %cst_11 = arith.constant 9.99999974E-6 : f32
    %21 = vector.broadcast %cst_11 : f32 to vector<1x32xf32>
    %22 = arith.addf %20, %21 : vector<1x32xf32>
    %23 = math.rsqrt %22 : vector<1x32xf32>
    %24 = vector.broadcast %23 : vector<1x32xf32> to vector<64x32xf32>
    %25 = arith.mulf %13, %24 : vector<64x32xf32>
    %c0_12 = arith.constant 0 : index
    %c0_13 = arith.constant 0 : index
    %26 = vector.load %arg4[%c0_12, %c0_13] : memref<1x32xf32, #tpu.memory_space<vmem>>, vector<1x32xf32>
    %27 = vector.broadcast %26 : vector<1x32xf32> to vector<64x32xf32>
    %28 = arith.mulf %25, %27 : vector<64x32xf32>
    %c0_14 = arith.constant 0 : index
    %c0_15 = arith.constant 0 : index
    %29 = vector.load %arg5[%c0_14, %c0_15] : memref<1x32xf32, #tpu.memory_space<vmem>>, vector<1x32xf32>
    %30 = vector.broadcast %29 : vector<1x32xf32> to vector<64x32xf32>
    %31 = arith.addf %28, %30 : vector<64x32xf32>
    %c0_16 = arith.constant 0 : index
    %c0_17 = arith.constant 0 : index
    %c0_18 = arith.constant 0 : index
    %32 = vector.load %arg6[%c0_16, %c0_17, %c0_18] : memref<1x64x32xf32, #tpu.memory_space<vmem>>, vector<1x64x32xf32>
    %33 = vector.shape_cast %32 : vector<1x64x32xf32> to vector<64x32xf32>
    %34 = vector.shape_cast %31 : vector<64x32xf32> to vector<1x64x32xf32>
    tpu.vector_store %arg6[%c0_16, %c0_17, %c0_18], %34 {strides = array<i32>} : memref<1x64x32xf32, #tpu.memory_space<vmem>>, vector<1x64x32xf32>,
    return
  }
  func.func @transform_0(%arg0: i32) -> (i32, i32, i32) {
    %c0_i32 = arith.constant 0 : i32
    %c0_i32_0 = arith.constant 0 : i32
    %c0_i32_1 = arith.constant 0 : i32
    return %arg0, %c0_i32, %c0_i32_0 : i32, i32, i32
  }
  func.func @transform_1(%arg0: i32) -> (i32, i32) {
    %c0_i32 = arith.constant 0 : i32
    %c0_i32_0 = arith.constant 0 : i32
    %c0_i32_1 = arith.constant 0 : i32
    return %c0_i32, %c0_i32_0 : i32, i32
  }
  func.func @transform_2(%arg0: i32) -> (i32, i32) {
    %c0_i32 = arith.constant 0 : i32
    %c0_i32_0 = arith.constant 0 : i32
    %c0_i32_1 = arith.constant 0 : i32
    return %c0_i32, %c0_i32_0 : i32, i32
  }
  func.func @transform_3(%arg0: i32) -> (i32, i32) {
    %c0_i32 = arith.constant 0 : i32
    %c0_i32_0 = arith.constant 0 : i32
    %c0_i32_1 = arith.constant 0 : i32
    return %c0_i32, %c0_i32_0 : i32, i32
  }
  func.func @transform_4(%arg0: i32) -> (i32, i32) {
    %c0_i32 = arith.constant 0 : i32
    %c0_i32_0 = arith.constant 0 : i32
    %c0_i32_1 = arith.constant 0 : i32
    return %c0_i32, %c0_i32_0 : i32, i32
  }
  func.func @transform_5(%arg0: i32) -> (i32, i32, i32) {
    %c0_i32 = arith.constant 0 : i32
    %c0_i32_0 = arith.constant 0 : i32
    %c0_i32_1 = arith.constant 0 : i32
    return %arg0, %c0_i32, %c0_i32_0 : i32, i32, i32
  }
}

</mosaic_0001>

<bundles_post_ra>
// kernel: tpu_custom_call.1
= control target key start
LH: loop header
LB: loop body
LE: loop exit
PB: predicated region body
PF: predicated region fallthrough
CT: control target
= control target key end

     0   :  { %s580_s18 = smov 0   ;;  %s640_s0 = inlined_call_operand.vmem [shape: f32[2,64,8], index: 0, kind: input, shape index: {}]   ;;  %s641_s1 = inlined_call_operand.vmem [shape: bf16[8,32], index: 1, kind: input, shape index: {}]   ;;  %s642_s2 = inlined_call_operand.vmem [shape: f32[1,32], index: 2, kind: input, shape index: {}]   ;;  %s643_s3 = inlined_call_operand.vmem [shape: f32[1,32], index: 3, kind: input, shape index: {}]   ;;  %s644_s4 = inlined_call_operand.vmem [shape: f32[1,32], index: 4, kind: input, shape index: {}]   ;;  %s645_s5 = inlined_call_operand.vmem [shape: f32[2,64,32], index: 5, kind: output, shape index: {}]  }
   0x1 LB: > { %s493_s19 = sadd.s32 4294967295, %s548_s18   ;;  %p497_p0 = scmp.ge.s32.totalorder %s548_s18, 1  ;;  %s548_s18 = sphi %s580_s18, %s15_s18  }
   0x2   : > { %p187_p1 = scmp.lt.s32.totalorder %s548_s18, 3 }
   0x4   : > { %p188_p2 = pnand %p497_p0, %p187_p1 }
   0x5   : > { %v238_v0 = vld [vmem:[%s641_s1] sm:$0xf] (!%p188_p2)  ;;  %vm259_vm0 = vcmask (!%p188_p2), 1043456   ;;  %p215_p3 = scmp.lt.s32.totalorder (!%p188_p2), %s493_s19, 1  ;;  %vm246_vm1 = vcmask (!%p188_p2), 64512   ;;  %vm328_vm2 = vcmask (!%p188_p2), 261120  }
   0x6   : > { %191 = sbr.rel (%p188_p2) target bundleno = 324 (0x144), region = 40  ;;  %530 = vmatprep.subr.msk.bf16.mxu0 (!%p188_p2), %vm259_vm0, %v238_v0  ;;  %v261_v1 = vsel (!%p188_p2), %vm259_vm0, %v238_v0, 0  ;;  %531 = vmatprep.subr.msk.bf16.mxu1 (!%p188_p2), %vm259_vm0, %v238_v0  ;;  %v502_v14 = vld [vmem:[%s642_s2] ss:$0 sm:$0xff] (!%p188_p2) }
   0x7   : > { %519 = vmatpush3.bf16.msra.mxu0 (!%p188_p2), %v261_v1  ;;  %529 = vmatpush3.bf16.msra.mxu1 (!%p188_p2), %v261_v1 }
   0xd   : > { %s647_s19 = smov (!%p215_p3, %s493_s19), 1 }
   0xe   : > { %s511_s22 = sshll.u32 %s647_s19, 6 }
   0xf   : > { %s219_s25 = scalar_lea.vmem %s640_s0, %s511_s22  ;;  %s224_s9 = scalar_lea.vmem %s645_s5, %s511_s22 }
  0x10   : > { %v226_v2 = vld [vmem:[%s219_s25] sm:$0xff]  ;;  %v227_v3 = vld [vmem:[%s219_s25 + $0x8] sm:$0xff]  ;;  %v228_v4 = vld [vmem:[%s219_s25 + $0x10] sm:$0xff] }
  0x11   : > { %v234_v5 = vpack.c.bf16 %v227_v3, %v226_v2  ;;  %v229_v6 = vld [vmem:[%s219_s25 + $0x18] sm:$0xff]  ;;  %v230_v7 = vld [vmem:[%s219_s25 + $0x20] sm:$0xff]  ;;  %v231_v8 = vld [vmem:[%s219_s25 + $0x28] sm:$0xff] }
  0x12   : > { %v235_v9 = vpack.c.bf16 %v229_v6, %v228_v4  ;;  %v236_v10 = vpack.c.bf16 %v231_v8, %v230_v7  ;;  %v232_v11 = vld [vmem:[%s219_s25 + $0x30] sm:$0xff]  ;;  %v233_v12 = vld [vmem:[%s219_s25 + $0x38] sm:$0xff] }
  0x13   : > { %520 = vmatprep.mubr.msk.bf16.mxu0 %vm246_vm1, %v234_v5  ;;  %v237_v13 = vpack.c.bf16 %v233_v12, %v232_v11 }
  0x14   : > { %521 = vmatmul.mubr.msk.bf16.vlgmr.msra.gmra.mrb[0].mxu0 %vm246_vm1, %v235_v9  ;;  %524 = vmatprep.mubr.msk.bf16.mxu1 %vm246_vm1, %v236_v10 }
  0x15   : > { %525 = vmatmul.mubr.msk.bf16.vlgmr.msra.gmra.mrb[0].mxu1 %vm246_vm1, %v237_v13 }
  0xe7   : > { %v522_v15 = vpop.f32.mrb[0].mxu0 }
  0xe8   : > { %v297_v16 = vpop.f32.mrb[1].mxu0  ;;  %v526_v17 = vpop.f32.mrb[0].mxu1  ;;  %v306_v23 = vadd.f32 %v522_v15, %v502_v14 }
  0xe9   : > { %v298_v18 = vadd.f32 %v502_v14, %v297_v16  ;;  %v523_v19 = vpop.f32.mrb[2].mxu0  ;;  %v313_v20 = vpop.f32.mrb[1].mxu1  ;;  %v322_v37 = vadd.f32 %v526_v17, %v502_v14 }
  0xea   : > { %v300_v21 = vpop.f32.mrb[3].mxu0  ;;  %v527_v22 = vpop.f32.mrb[2].mxu1  ;;  %v309_v27 = vadd.f32 %v523_v19, %v502_v14  ;;  %v314_v29 = vadd.f32 %v502_v14, %v313_v20  ;;  %v332_v31 = vsel %vm328_vm2, %v306_v23, 0.0 }
  0xeb   : > { %v301_v24 = vadd.f32 %v502_v14, %v300_v21  ;;  %v316_v25 = vpop.f32.mrb[3].mxu1  ;;  %v329_v26 = vsel %vm328_vm2, %v298_v18, 0.0  ;;  %v325_v39 = vadd.f32 %v527_v22, %v502_v14  ;;  %v340_v42 = vsel %vm328_vm2, %v322_v37, 0.0 }
  0xec   : > { %v334_v33 = vsel %vm328_vm2, %v309_v27, 0.0  ;;  %v336_v34 = vsel %vm328_vm2, %v314_v29, 0.0  ;;  %v317_v35 = vadd.f32 %v502_v14, %v316_v25 }
  0xed   : > { %v330_v28 = vsel %vm328_vm2, %v301_v24, 0.0  ;;  %v342_v44 = vsel %vm328_vm2, %v325_v39, 0.0 }
  0xee   : > { %v331_v30 = vadd.f32 %v330_v28, %v329_v26  ;;  %v338_v40 = vsel %vm328_vm2, %v317_v35, 0.0 }
  0xf0   : > { %v333_v32 = vadd.f32 %v332_v31, %v331_v30  ;;  %v507_v30 = vld [vmem:[%s643_s3] ss:$0 sm:$0xff] }
  0xf2   : > { %v335_v36 = vadd.f32 %v334_v33, %v333_v32 }
  0xf4   : > { %v337_v38 = vadd.f32 %v336_v34, %v335_v36 }
  0xf6   : > { %v339_v41 = vadd.f32 %v338_v40, %v337_v38 }
  0xf8   : > { %v341_v43 = vadd.f32 %v340_v42, %v339_v41 }
  0xfa   : > { %v343_v45 = vadd.f32 %v342_v44, %v341_v43 }
  0xfc   : > { %v344_v46 = vrot.slane %v343_v45, 4 }
  0xfe   : > { %v345_v47 = vadd.f32 %v344_v46, %v343_v45 }
 0x100   : > { %v346_v48 = vrot.slane %v345_v47, 2 }
 0x102   : > { %v347_v49 = vadd.f32 %v346_v48, %v345_v47 }
 0x104   : > { %v348_v50 = vrot.slane %v347_v49, 1 }
 0x106   : > { %v349_v51 = vadd.f32 %v348_v50, %v347_v49 }
 0x108   : > { %v350_v52 = vmul.f32 0.015625, %v349_v51 }
 0x10a   : > { %v351_v53 = vsub.f32 %v298_v18, %v350_v52  ;;  %v352_v54 = vsub.f32 %v301_v24, %v350_v52  ;;  %v353_v55 = vsub.f32 %v306_v23, %v350_v52  ;;  %v354_v56 = vsub.f32 %v309_v27, %v350_v52 }
 0x10b   : > { %v355_v57 = vsub.f32 %v314_v29, %v350_v52  ;;  %v356_v58 = vsub.f32 %v317_v35, %v350_v52  ;;  %v357_v59 = vsub.f32 %v322_v37, %v350_v52  ;;  %v358_v60 = vsub.f32 %v325_v39, %v350_v52  ;;  %v508_v39 = vld [vmem:[%s644_s4] ss:$0 sm:$0xff] }
 0x10c   : > { %v359_v61 = vmul.f32 %v351_v53, %v351_v53  ;;  %v360_v62 = vmul.f32 %v352_v54, %v352_v54  ;;  %v361_v63 = vmul.f32 %v353_v55, %v353_v55  ;;  %v362_v0 = vmul.f32 %v354_v56, %v354_v56 }
 0x10d   : > { %v363_v4 = vmul.f32 %v355_v57, %v355_v57  ;;  %v364_v7 = vmul.f32 %v356_v58, %v356_v58  ;;  %v365_v10 = vmul.f32 %v357_v59, %v357_v59  ;;  %v366_v13 = vmul.f32 %v358_v60, %v358_v60 }
 0x10e   : > { %v367_v1 = vsel %vm328_vm2, %v359_v61, 0.0  ;;  %v368_v2 = vsel %vm328_vm2, %v360_v62, 0.0  ;;  %v370_v5 = vsel %vm328_vm2, %v361_v63, 0.0  ;;  %v372_v8 = vsel %vm328_vm2, %v362_v0, 0.0 }
 0x10f   : > { %v369_v3 = vadd.f32 %v368_v2, %v367_v1  ;;  %v374_v11 = vsel %vm328_vm2, %v363_v4, 0.0  ;;  %v376_v14 = vsel %vm328_vm2, %v364_v7, 0.0  ;;  %v378_v16 = vsel %vm328_vm2, %v365_v10, 0.0 }
 0x110   : > { %v380_v18 = vsel %vm328_vm2, %v366_v13, 0.0 }
 0x111   : > { %v371_v6 = vadd.f32 %v370_v5, %v369_v3 }
 0x113   : > { %v373_v9 = vadd.f32 %v372_v8, %v371_v6 }
 0x115   : > { %v375_v12 = vadd.f32 %v374_v11, %v373_v9 }
 0x117   : > { %v377_v15 = vadd.f32 %v376_v14, %v375_v12 }
 0x119   : > { %v379_v17 = vadd.f32 %v378_v16, %v377_v15 }
 0x11b   : > { %v381_v19 = vadd.f32 %v380_v18, %v379_v17 }
 0x11d   : > { %v382_v20 = vrot.slane %v381_v19, 4 }
 0x11f   : > { %v383_v21 = vadd.f32 %v382_v20, %v381_v19 }
 0x121   : > { %v384_v22 = vrot.slane %v383_v21, 2 }
 0x123   : > { %v385_v23 = vadd.f32 %v384_v22, %v383_v21 }
 0x125   : > { %v386_v24 = vrot.slane %v385_v23, 1 }
 0x127   : > { %v387_v25 = vadd.f32 %v386_v24, %v385_v23 }
 0x129   : > { %v388_v26 = vmul.f32 0.015625, %v387_v25 }
 0x12b   : > { %v389_v27 = vmax.f32 %v388_v26, 0.0 }
 0x12d   : > { %v390_v28 = vadd.f32 1e-05, %v389_v27 }
 0x12f   : > { %540 = vrsqrt.f32 %v390_v28 }
 0x139   : > { %v541_v29 = vpop.eup %540 }
 0x13a   : > { %v392_v31 = vmul.f32 %v541_v29, %v351_v53  ;;  %v393_v32 = vmul.f32 %v541_v29, %v352_v54  ;;  %v394_v33 = vmul.f32 %v541_v29, %v353_v55  ;;  %v395_v34 = vmul.f32 %v541_v29, %v354_v56 }
 0x13b   : > { %v396_v35 = vmul.f32 %v541_v29, %v355_v57  ;;  %v397_v36 = vmul.f32 %v541_v29, %v356_v58  ;;  %v398_v37 = vmul.f32 %v541_v29, %v357_v59  ;;  %v399_v38 = vmul.f32 %v541_v29, %v358_v60 }
 0x13c   : > { %v407_v40 = vmul.f32 %v507_v30, %v392_v31  ;;  %v408_v41 = vmul.f32 %v507_v30, %v393_v32  ;;  %v409_v42 = vmul.f32 %v507_v30, %v394_v33  ;;  %v410_v43 = vmul.f32 %v507_v30, %v395_v34 }
 0x13d   : > { %v411_v44 = vmul.f32 %v507_v30, %v396_v35  ;;  %v412_v45 = vmul.f32 %v507_v30, %v397_v36  ;;  %v413_v46 = vmul.f32 %v507_v30, %v398_v37  ;;  %v414_v47 = vmul.f32 %v507_v30, %v399_v38 }
 0x13e   : > { %v422_v48 = vadd.f32 %v508_v39, %v407_v40  ;;  %v423_v49 = vadd.f32 %v508_v39, %v408_v41  ;;  %v424_v50 = vadd.f32 %v508_v39, %v409_v42  ;;  %v425_v51 = vadd.f32 %v508_v39, %v410_v43 }
 0x13f   : > { %v426_v52 = vadd.f32 %v508_v39, %v411_v44  ;;  %v427_v53 = vadd.f32 %v508_v39, %v412_v45  ;;  %v428_v54 = vadd.f32 %v508_v39, %v413_v46  ;;  %v429_v55 = vadd.f32 %v508_v39, %v414_v47 }
 0x140   : > { %430 = vst.msk [vmem:[%s224_s9] sm:$0xff] %vm328_vm2, %v422_v48  ;;  %431 = vst.msk [vmem:[%s224_s9 + $0x8] sm:$0xff] %vm328_vm2, %v423_v49 }
 0x141   : > { %432 = vst.msk [vmem:[%s224_s9 + $0x10] sm:$0xff] %vm328_vm2, %v424_v50  ;;  %433 = vst.msk [vmem:[%s224_s9 + $0x18] sm:$0xff] %vm328_vm2, %v425_v51 }
 0x142   : > { %434 = vst.msk [vmem:[%s224_s9 + $0x20] sm:$0xff] %vm328_vm2, %v426_v52  ;;  %435 = vst.msk [vmem:[%s224_s9 + $0x28] sm:$0xff] %vm328_vm2, %v427_v53 }
 0x143   : > { %436 = vst.msk [vmem:[%s224_s9 + $0x30] sm:$0xff] %vm328_vm2, %v428_v54  ;;  %437 = vst.msk [vmem:[%s224_s9 + $0x38] sm:$0xff] %vm328_vm2, %v429_v55 }
 0x144 PF: > { %s15_s18 = sadd.s32 1, %s548_s18  }
 0x145   : > { %p12_p4 = scmp.ge.s32.totalorder %s15_s18, 4  }
 0x147   :  { %14 = sbr.rel (!%p12_p4) target bundleno = 1 (0x1), region = 70 }

</bundles_post_ra>
